<compile_context>
chip_gen: v7x
topology: tpu7x:2x2x1
jax: 0.10.0
libtpu: 0.0.40
codegen_flags: <defaults>
</compile_context>

<pallas_src>
import jax
import jax.numpy as jnp
from jax.experimental import pallas as pl
from jax.experimental.pallas import tpu as pltpu


_SMALL_C_MAX = 32  # at or below this, conv_1 runs on the VPU instead of the MXU


def _pixel_attn_kernel_small_c(x_ref, w1c_ref, b1_ref, w2_ref, b2_ref, o_ref):
    # x_ref  : (C, TP)       pixel tile, channels on sublanes, pixels on lanes
    # w1c_ref: (C_in, C, 1)  conv_1 weight: w1c[ci] is the (C_out, 1) column
    # b1_ref : (C, 1)        conv_1 bias
    # w2_ref : (C, 1)        conv_2 weight
    # b2_ref : (1,)  SMEM    conv_2 bias scalar
    # o_ref  : (C, TP)
    x = x_ref[...]
    xc = x.astype(jnp.float32)
    C = x.shape[0]
    # conv_1 (1x1) as C broadcast-FMAs on the VPU (MXU would be <3% utilized
    # for tiny C and forces padded weight tiles).
    acc = jnp.zeros(x.shape, jnp.float32)
    for ci in range(C):
        acc = acc + w1c_ref[ci] * xc[ci:ci + 1, :]      # (C,1)*(1,TP) -> (C,TP)
    h = jnp.maximum(acc + b1_ref[...], 0.0)
    # conv_2 (C -> 1): VPU multiply + sublane (XLU) reduce, no width-1 MXU matmul.
    logit = jnp.sum(w2_ref[...] * h, axis=0, keepdims=True) + b2_ref[0]
    gate = jax.nn.sigmoid(logit)                        # (1, TP) per-pixel weight
    o_ref[...] = (xc * gate).astype(o_ref.dtype)


def _pixel_attn_kernel_mxu(x_ref, w1t_ref, b1_ref, w2_ref, b2_ref, o_ref):
    # Same math; conv_1 on the MXU for larger channel counts.
    # w1t_ref: (C_out, C_in)
    x = x_ref[...]
    xc = x.astype(jnp.float32)
    h = jnp.dot(w1t_ref[...], xc, preferred_element_type=jnp.float32) + b1_ref[...]
    h = jnp.maximum(h, 0.0)
    logit = jnp.sum(w2_ref[...] * h, axis=0, keepdims=True) + b2_ref[0]
    gate = jax.nn.sigmoid(logit)
    o_ref[...] = (xc * gate).astype(o_ref.dtype)


def pixel_attn(x_nchw, w1, b1, w2, b2, *, tile_p=8192):
    """PixelAttn forward.

    x_nchw: (N, C, H, W).  w1: (C_in, C_out), b1: (C,), w2: (C_in, 1), b2: (1,)
    (matmul form of the 1x1 conv weights: w1[ci, co] == conv_1.weight[co, ci]).
    """
    N, C, H, W = x_nchw.shape
    P = H * W
    itemsize = jnp.dtype(x_nchw.dtype).itemsize

    # Free view: NCHW kept as-is, just merge the spatial dims onto the lane axis.
    x3 = x_nchw.reshape(N, C, P)

    # Lane-dense pixel tile: multiple of 128, capped by P and a ~2 MiB block budget
    # (double-buffered in+out blocks stay well under v5e's 16 MiB scoped VMEM).
    p_round = -(-P // 128) * 128
    max_tp_vmem = max(128, ((2 * 1024 * 1024) // max(1, C * itemsize)) // 128 * 128)
    tp = max(128, (min(tile_p, p_round, max_tp_vmem) // 128) * 128)
    P_pad = -(-P // tp) * tp
    if P_pad != P:
        x3 = jnp.pad(x3, ((0, 0), (0, 0), (0, P_pad - P)))

    b1_col = b1.reshape(C, 1).astype(jnp.float32)
    w2_col = w2.reshape(C, 1).astype(jnp.float32)
    b2_vec = b2.reshape(1).astype(jnp.float32)

    if C <= _SMALL_C_MAX:
        kernel = _pixel_attn_kernel_small_c
        w1_arg = w1.astype(jnp.float32).reshape(C, C, 1)    # (C_in, C_out, 1)
        w1_spec = pl.BlockSpec((C, C, 1), lambda n, j: (0, 0, 0))
    else:
        kernel = _pixel_attn_kernel_mxu
        w1_arg = jnp.transpose(w1.astype(jnp.float32))      # (C_out, C_in)
        w1_spec = pl.BlockSpec((C, C), lambda n, j: (0, 0))

    n_pt = P_pad // tp
    blk_bytes = C * tp * itemsize
    weight_bytes = (C * C + 3 * C + 8) * 4
    vmem_limit = int(min(32 * 1024 * 1024,
                         max(4 * 1024 * 1024,
                             4 * blk_bytes + 2 * weight_bytes + 2 * 1024 * 1024)))

    out3 = pl.pallas_call(
        kernel,
        out_shape=jax.ShapeDtypeStruct((N, C, P_pad), x3.dtype),
        grid_spec=pltpu.PrefetchScalarGridSpec(
            num_scalar_prefetch=0,
            grid=(N, n_pt),
            in_specs=[
                pl.BlockSpec((None, C, tp), lambda n, j: (n, 0, j)),   # x tile
                w1_spec,                                               # conv_1 weight
                pl.BlockSpec((C, 1), lambda n, j: (0, 0)),             # b1
                pl.BlockSpec((C, 1), lambda n, j: (0, 0)),             # w2
                pl.BlockSpec(memory_space=pltpu.MemorySpace.SMEM),     # b2 scalar
            ],
            out_specs=pl.BlockSpec((None, C, tp), lambda n, j: (n, 0, j)),
        ),
        compiler_params=pltpu.CompilerParams(
            dimension_semantics=("parallel", "parallel"),
            vmem_limit_bytes=vmem_limit),
    )(x3, w1_arg, b1_col, w2_col, b2_vec)

    if P_pad != P:
        out3 = out3[:, :, :P]
    return out3.reshape(N, C, H, W)


def pixel_attn_ref(x_nchw, w1, b1, w2, b2):
    """Pure-JAX reference matching the PyTorch forward semantics (NCHW)."""
    h = jnp.einsum('nchw,cd->ndhw', x_nchw, w1) + b1[None, :, None, None]
    h = jnp.maximum(h, 0.0)
    logit = jnp.einsum('nchw,ck->nkhw', h, w2) + b2[None, :, None, None]
    return x_nchw * jax.nn.sigmoid(logit)


if __name__ == "__main__":
    key = jax.random.PRNGKey(0)
    k_x, k_w1, k_b1, k_w2, k_b2, k_x2 = jax.random.split(key, 6)

    # Case 1: shapes consistent with the module (batch=2, channels=4, 16x16).
    N, C, H, W = 2, 4, 16, 16
    x = jax.random.normal(k_x, (N, C, H, W), dtype=jnp.float32)
    w1 = jax.random.normal(k_w1, (C, C), dtype=jnp.float32) * 0.5
    b1 = jax.random.normal(k_b1, (C,), dtype=jnp.float32) * 0.1
    w2 = jax.random.normal(k_w2, (C, 1), dtype=jnp.float32) * 0.5
    b2 = jax.random.normal(k_b2, (1,), dtype=jnp.float32) * 0.1

    out = jax.block_until_ready(pixel_attn(x, w1, b1, w2, b2))
    ref = pixel_attn_ref(x, w1, b1, w2, b2)
    assert out.shape == (N, C, H, W)
    assert jnp.allclose(out, ref, atol=1e-5, rtol=1e-5), "mismatch vs reference (case 1)"

    # Case 2: H*W not a multiple of 128 -> exercises the padded-tail path.
    N2, H2, W2 = 1, 20, 20
    x2 = jax.random.normal(k_x2, (N2, C, H2, W2), dtype=jnp.float32)
    out2 = jax.block_until_ready(pixel_attn(x2, w1, b1, w2, b2))
    ref2 = pixel_attn_ref(x2, w1, b1, w2, b2)
    assert out2.shape == (N2, C, H2, W2)
    assert jnp.allclose(out2, ref2, atol=1e-5, rtol=1e-5), "mismatch vs reference (case 2)"

    print("KERNEL_OK")
</pallas_src>

<mosaic_0001>
module attributes {stable_mosaic.version = 11 : i64} {
  func.func @_pixel_attn_kernel_small_c(%arg0: i32, %arg1: i32, %arg2: memref<1x4x256xf32, #tpu.memory_space<vmem>>, %arg3: memref<4x4x1xf32, #tpu.memory_space<vmem>>, %arg4: memref<4x1xf32, #tpu.memory_space<vmem>>, %arg5: memref<4x1xf32, #tpu.memory_space<vmem>>, %arg6: memref<1xf32, #tpu.memory_space<smem>>, %arg7: memref<1x4x256xf32, #tpu.memory_space<vmem>>) attributes {dimension_semantics = [#tpu.dimension_semantics<parallel>, #tpu.dimension_semantics<parallel>], iteration_bounds = array<i64: 2, 1>, scalar_prefetch = 0 : i64, scratch_operands = 0 : i64, tpu.core_type = #tpu.core_type<tc>, window_params = [{transform_indices = @transform_0, window_bounds = array<i64: 1, 4, 256>}, {pipeline_mode = #tpu.pipeline_mode<synchronous>, transform_indices = @transform_1, window_bounds = array<i64: 4, 4, 1>}, {pipeline_mode = #tpu.pipeline_mode<synchronous>, transform_indices = @transform_2, window_bounds = array<i64: 4, 1>}, {pipeline_mode = #tpu.pipeline_mode<synchronous>, transform_indices = @transform_3, window_bounds = array<i64: 4, 1>}, {transform_indices = @transform_4, window_bounds = array<i64: 1>}, {transform_indices = @transform_5, window_bounds = array<i64: 1, 4, 256>}]} {
    %c0 = arith.constant 0 : index
    %c0_0 = arith.constant 0 : index
    %c0_1 = arith.constant 0 : index
    %0 = vector.load %arg2[%c0, %c0_0, %c0_1] : memref<1x4x256xf32, #tpu.memory_space<vmem>>, vector<1x4x256xf32>
    %1 = vector.shape_cast %0 : vector<1x4x256xf32> to vector<4x256xf32>
    %cst = arith.constant 0.000000e+00 : f32
    %2 = vector.broadcast %cst : f32 to vector<4x256xf32>
    %c0_2 = arith.constant 0 : index
    %c0_3 = arith.constant 0 : index
    %c0_4 = arith.constant 0 : index
    %3 = vector.load %arg3[%c0_2, %c0_3, %c0_4] : memref<4x4x1xf32, #tpu.memory_space<vmem>>, vector<1x4x1xf32>
    %4 = vector.shape_cast %3 : vector<1x4x1xf32> to vector<4x1xf32>
    %5 = vector.extract_strided_slice %1 {offsets = [0, 0], sizes = [1, 256], strides = [1, 1]} : vector<4x256xf32> to vector<1x256xf32>
    %6 = vector.broadcast %4 : vector<4x1xf32> to vector<4x256xf32>
    %7 = vector.broadcast %5 : vector<1x256xf32> to vector<4x256xf32>
    %8 = arith.mulf %6, %7 : vector<4x256xf32>
    %9 = arith.addf %2, %8 : vector<4x256xf32>
    %c1 = arith.constant 1 : index
    %c0_5 = arith.constant 0 : index
    %c0_6 = arith.constant 0 : index
    %10 = vector.load %arg3[%c1, %c0_5, %c0_6] : memref<4x4x1xf32, #tpu.memory_space<vmem>>, vector<1x4x1xf32>
    %11 = vector.shape_cast %10 : vector<1x4x1xf32> to vector<4x1xf32>
    %12 = vector.extract_strided_slice %1 {offsets = [1, 0], sizes = [1, 256], strides = [1, 1]} : vector<4x256xf32> to vector<1x256xf32>
    %13 = vector.broadcast %11 : vector<4x1xf32> to vector<4x256xf32>
    %14 = vector.broadcast %12 : vector<1x256xf32> to vector<4x256xf32>
    %15 = arith.mulf %13, %14 : vector<4x256xf32>
    %16 = arith.addf %9, %15 : vector<4x256xf32>
    %c2 = arith.constant 2 : index
    %c0_7 = arith.constant 0 : index
    %c0_8 = arith.constant 0 : index
    %17 = vector.load %arg3[%c2, %c0_7, %c0_8] : memref<4x4x1xf32, #tpu.memory_space<vmem>>, vector<1x4x1xf32>
    %18 = vector.shape_cast %17 : vector<1x4x1xf32> to vector<4x1xf32>
    %19 = vector.extract_strided_slice %1 {offsets = [2, 0], sizes = [1, 256], strides = [1, 1]} : vector<4x256xf32> to vector<1x256xf32>
    %20 = vector.broadcast %18 : vector<4x1xf32> to vector<4x256xf32>
    %21 = vector.broadcast %19 : vector<1x256xf32> to vector<4x256xf32>
    %22 = arith.mulf %20, %21 : vector<4x256xf32>
    %23 = arith.addf %16, %22 : vector<4x256xf32>
    %c3 = arith.constant 3 : index
    %c0_9 = arith.constant 0 : index
    %c0_10 = arith.constant 0 : index
    %24 = vector.load %arg3[%c3, %c0_9, %c0_10] : memref<4x4x1xf32, #tpu.memory_space<vmem>>, vector<1x4x1xf32>
    %25 = vector.shape_cast %24 : vector<1x4x1xf32> to vector<4x1xf32>
    %26 = vector.extract_strided_slice %1 {offsets = [3, 0], sizes = [1, 256], strides = [1, 1]} : vector<4x256xf32> to vector<1x256xf32>
    %27 = vector.broadcast %25 : vector<4x1xf32> to vector<4x256xf32>
    %28 = vector.broadcast %26 : vector<1x256xf32> to vector<4x256xf32>
    %29 = arith.mulf %27, %28 : vector<4x256xf32>
    %30 = arith.addf %23, %29 : vector<4x256xf32>
    %c0_11 = arith.constant 0 : index
    %c0_12 = arith.constant 0 : index
    %31 = vector.load %arg4[%c0_11, %c0_12] : memref<4x1xf32, #tpu.memory_space<vmem>>, vector<4x1xf32>
    %32 = vector.broadcast %31 : vector<4x1xf32> to vector<4x256xf32>
    %33 = arith.addf %30, %32 : vector<4x256xf32>
    %cst_13 = arith.constant 0.000000e+00 : f32
    %34 = vector.broadcast %cst_13 : f32 to vector<4x256xf32>
    %35 = arith.maximumf %33, %34 : vector<4x256xf32>
    %c0_14 = arith.constant 0 : index
    %c0_15 = arith.constant 0 : index
    %36 = vector.load %arg5[%c0_14, %c0_15] : memref<4x1xf32, #tpu.memory_space<vmem>>, vector<4x1xf32>
    %37 = vector.broadcast %36 : vector<4x1xf32> to vector<4x256xf32>
    %38 = arith.mulf %37, %35 : vector<4x256xf32>
    %cst_16 = arith.constant dense<0.000000e+00> : vector<256xf32>
    %39 = vector.multi_reduction <add>, %38, %cst_16 [0] : vector<4x256xf32> to vector<256xf32>
    %40 = vector.shape_cast %39 : vector<256xf32> to vector<1x256xf32>
    %c0_17 = arith.constant 0 : index
    %41 = memref.load %arg6[%c0_17] : memref<1xf32, #tpu.memory_space<smem>>
    %42 = vector.broadcast %41 : f32 to vector<1x256xf32>
    %43 = arith.addf %40, %42 : vector<1x256xf32>
    %44 = arith.negf %43 : vector<1x256xf32>
    %45 = math.exp %44 : vector<1x256xf32>
    %cst_18 = arith.constant 1.000000e+00 : f32
    %46 = vector.broadcast %cst_18 : f32 to vector<1x256xf32>
    %47 = arith.addf %46, %45 : vector<1x256xf32>
    %48 = arith.divf %46, %47 : vector<1x256xf32>
    %49 = vector.broadcast %48 : vector<1x256xf32> to vector<4x256xf32>
    %50 = arith.mulf %1, %49 : vector<4x256xf32>
    %c0_19 = arith.constant 0 : index
    %c0_20 = arith.constant 0 : index
    %c0_21 = arith.constant 0 : index
    %51 = vector.load %arg7[%c0_19, %c0_20, %c0_21] : memref<1x4x256xf32, #tpu.memory_space<vmem>>, vector<1x4x256xf32>
    %52 = vector.shape_cast %51 : vector<1x4x256xf32> to vector<4x256xf32>
    %53 = vector.shape_cast %50 : vector<4x256xf32> to vector<1x4x256xf32>
    tpu.vector_store %arg7[%c0_19, %c0_20, %c0_21], %53 {strides = array<i32>} : memref<1x4x256xf32, #tpu.memory_space<vmem>>, vector<1x4x256xf32>,
    return
  }
  func.func @transform_0(%arg0: i32, %arg1: i32) -> (i32, i32, i32) {
    %c0_i32 = arith.constant 0 : i32
    %c0_i32_0 = arith.constant 0 : i32
    return %arg0, %c0_i32, %arg1 : i32, i32, i32
  }
  func.func @transform_1(%arg0: i32, %arg1: i32) -> (i32, i32, i32) {
    %c0_i32 = arith.constant 0 : i32
    %c0_i32_0 = arith.constant 0 : i32
    %c0_i32_1 = arith.constant 0 : i32
    %c0_i32_2 = arith.constant 0 : i32
    return %c0_i32, %c0_i32_0, %c0_i32_1 : i32, i32, i32
  }
  func.func @transform_2(%arg0: i32, %arg1: i32) -> (i32, i32) {
    %c0_i32 = arith.constant 0 : i32
    %c0_i32_0 = arith.constant 0 : i32
    %c0_i32_1 = arith.constant 0 : i32
    return %c0_i32, %c0_i32_0 : i32, i32
  }
  func.func @transform_3(%arg0: i32, %arg1: i32) -> (i32, i32) {
    %c0_i32 = arith.constant 0 : i32
    %c0_i32_0 = arith.constant 0 : i32
    %c0_i32_1 = arith.constant 0 : i32
    return %c0_i32, %c0_i32_0 : i32, i32
  }
  func.func @transform_4(%arg0: i32, %arg1: i32) -> i32 {
    %c0_i32 = arith.constant 0 : i32
    %c0_i32_0 = arith.constant 0 : i32
    return %c0_i32 : i32
  }
  func.func @transform_5(%arg0: i32, %arg1: i32) -> (i32, i32, i32) {
    %c0_i32 = arith.constant 0 : i32
    %c0_i32_0 = arith.constant 0 : i32
    return %arg0, %c0_i32, %arg1 : i32, i32, i32
  }
}

</mosaic_0001>

<bundles_post_ra>
// kernel: tpu_custom_call.1
= control target key start
LH: loop header
LB: loop body
LE: loop exit
PB: predicated region body
PF: predicated region fallthrough
CT: control target
= control target key end

     0   :  { %s862_s0 = inlined_call_operand.vmem [shape: f32[2,4,256], index: 0, kind: input, shape index: {}]   ;;  %s863_s1 = inlined_call_operand.vmem [shape: f32[4,4,1], index: 1, kind: input, shape index: {}]   ;;  %s864_s2 = inlined_call_operand.vmem [shape: f32[4,1], index: 2, kind: input, shape index: {}]   ;;  %s865_s3 = inlined_call_operand.vmem [shape: f32[4,1], index: 3, kind: input, shape index: {}]   ;;  %s866_s4 = inlined_call_operand.<no memory space> [shape: f32[1], index: 4, kind: input, shape index: {}]   ;;  %s867_s5 = inlined_call_operand.hbm [shape: f32[2,4,256], index: 5, kind: output, shape index: {}]  }
   0x1   :  { %10 = sst [smem:[#allocation2]] %s866_s4 }
   0x2   :  { %11 = vsyncpa [#allocation4], 0 }
   0x3   :  { %13 = vsyncpa [#allocation4 + $0x1], 0  ;;  %s721_s20 = smov 0   ;;  %s723_s21 = smov 0  }
   0x4   :  { %s725_s22 = smov 0   ;;  %s727_s23 = smov 0  }
   0x5   :  { %s729_s24 = smov 0   ;;  %s731_s25 = smov 0  }
   0x6 LB: > { %s520_s4 = sadd.s32 4294967295, %s684_s25   ;;  %s521_s26 = sadd.s32 4294967294, %s684_s25   ;;  %s684_s25 = sphi %s731_s25, %s19_s25   ;;  %s680_s24 = sphi %s729_s24, %s874_s24   ;;  %s676_s23 = sphi %s727_s23, %s873_s23   ;;  %s672_s22 = sphi %s725_s22, %s872_s22   ;;  %s668_s21 = sphi %s723_s21, %s871_s21   ;;  %s664_s20 = sphi %s721_s20, %s870_s20  }
   0x7   : > { %s31_s27 = sadd.s32 1, %s680_s24  ;;  %s152_s28 = sadd.s32 1, %s672_s22 }
   0x8   : > { %p33_p0 = scmp.ge.s32.totalorder %s31_s27, 2  ;;  %p162_p1 = scmp.ne.s32.totalorder %s672_s22, %s668_s21 }
   0x9   : > { %p163_p2 = scmp.eq.s32.totalorder %s520_s4, 1  ;;  %p168_p3 = scmp.ne.s32.totalorder %s668_s21, %s664_s20 }
   0xa   : > { %s876_s27 = smov (%p33_p0, %s31_s27), 0  ;;  %p169_p5 = scmp.eq.s32.totalorder %s521_s26, 1 }
   0xb   : > { %p761_p4 = por %p163_p2, %p162_p1  ;;  %s147_s30 = ssub.s32 %s680_s24, %s876_s27 }
   0xc   : > { %p524_p6 = scmp.ge.s32.totalorder %s684_s25, 1  ;;  %p150_p7 = scmp.eq.s32.totalorder %s147_s30, 0 }
   0xd   : > { %p768_p8 = por %p169_p5, %p168_p3  ;;  %p212_p9 = scmp.lt.s32.totalorder %s684_s25, 3 }
   0xe   : > { %s774_s7 = scalar_select %p150_p7, %s672_s22, %s152_s28  }
   0xf   : > { %p213_p10 = pnand %p524_p6, %p212_p9 }
  0x10   : > { %v529_v0 = vld [vmem:[%s863_s1 + $0x8] sm:$0xf] (!%p213_p10)  ;;  %v256_v1 = vld [vmem:[%s863_s1] sm:$0xf] (!%p213_p10)  ;;  %v686_v2 = vmov (!%p213_p10), 0   ;;  %p245_p11 = scmp.lt.s32.totalorder (!%p213_p10), %s676_s23, 1  ;;  %v263_v7 = vlaneseq (!%p213_p10) }
  0x11   : > { %216 = sbr.rel (%p213_p10) target bundleno = 224 (0xe0), region = 40  ;;  %597 = vset.pattern.permute.xlu1 (!%p213_p10), %v686_v2  ;;  %596 = vset.pattern.permute.xlu0 (!%p213_p10), %v686_v2  ;;  %v530_v3 = vld [vmem:[%s863_s1 + $0xc] sm:$0xf] (!%p213_p10)  ;;  %v528_v4 = vld [vmem:[%s863_s1 + $0x4] sm:$0xf] (!%p213_p10)  ;;  %vm390_vm0 = vcmask (!%p213_p10), 1043456  }
  0x12   : > { %318 = vperm.xlu1 (!%p213_p10), %597, %v529_v0   ;;  %259 = vperm.xlu0 (!%p213_p10), %596, %v256_v1   ;;  %v382_v5 = vld [vmem:[%s865_s3] sm:$0xf] (!%p213_p10)  ;;  %v264_v8 = vshrl.u32 (!%p213_p10), %v263_v7, 7  ;;  %s405_s9 = sld [smem:[#allocation2]] (!%p213_p10)  ;;  %s241_s10 = sand.u32 (!%p213_p10), 1, %s668_s21  }
  0x13   : > { %v372_v6 = vld [vmem:[%s864_s2] sm:$0xf] (!%p213_p10)  ;;  %s525_s11 = sshll.u32 (!%p213_p10), %s241_s10, 3  ;;  %s539_s12 = sshll.u32 (!%p213_p10), %s676_s23, 7 }
  0x14   : > { %v265_v9 = vsub.s32 (!%p213_p10), 0, %v264_v8  ;;  %v269_v10 = vsub.s32 (!%p213_p10), 4, %v264_v8  ;;  %v294_v11 = vsub.s32 (!%p213_p10), 1, %v264_v8  ;;  %v298_v12 = vsub.s32 (!%p213_p10), 5, %v264_v8  ;;  %s243_s13 = scalar_lea.vmem (!%p213_p10), [#allocation3], %s525_s11  ;;  %s815_s17 = scalar_lea.hbm (!%p213_p10), %s867_s5, %s539_s12 }
  0x15   : > { %v323_v14 = vsub.s32 (!%p213_p10), 2, %v264_v8  ;;  %v327_v15 = vsub.s32 (!%p213_p10), 6, %v264_v8  ;;  %v352_v16 = vsub.s32 (!%p213_p10), 3, %v264_v8  ;;  %v356_v17 = vsub.s32 (!%p213_p10), 7, %v264_v8  ;;  %s444_s14 = sshll.u32 (!%p213_p10), %s243_s13, 4  ;;  %s428_s18 = scalar_lea.sflag (!%p213_p10), [#allocation4], %s241_s10  ;;  %s817_s14 = int_to_ptr.vmem [resolvable:$true] %s444_s14 }
  0x16   : > { %347 = vperm.xlu1 (!%p213_p10), %597, %v530_v3   ;;  %289 = vperm.xlu0 (!%p213_p10), %596, %v528_v4   ;;  %s606_s19 = scalar_lea.vmem (!%p213_p10), %s817_s14, 128 }
  0x17   : > { %p607_p12 = scmp.ne.s32.totalorder (!%p213_p10), %s817_s14, %s606_s19 }
  0x18   : > { %s246_s4 = scalar_select %p245_p11, %s676_s23, 1  ;;  %v406_v8 = vstv %s405_s9 }
  0x19   : > { %p608_p13 = pnand %p607_p12, %p761_p4  ;;  %s687_s23 = smov [#allocation3]  }
  0x1a   : > { %385 = vperm.xlu1 %597, %v382_v5   ;;  %375 = vperm.xlu0 %596, %v372_v6   ;;  %s538_s26 = sshll.u32 %s246_s4, 3  ;;  %s610_s4 = sshll.u32 %s687_s23, 4  ;;  %s611_s4 = int_to_ptr.vmem [resolvable:$false] %s610_s4 }
  0x1b   : > { %s252_s8 = scalar_lea.vmem %s862_s0, %s538_s26  ;;  %p609_p0 = pneg %p608_p13 }
  0x1c   : > { %v799_v13 = vld [vmem:[%s252_s8] sm:$0xff]  ;;  %s612_s26 = scalar_lea.vmem %s611_s4, 256  ;;  %p613_p1 = scmp.lt.s32.totalorder %s817_s14, %s611_s4 }
  0x1d   : > { %v266_v18 = vrot.slane %v799_v13, %v265_v9  ;;  %v270_v19 = vrot.slane %v799_v13, %v269_v10  ;;  %v295_v20 = vrot.slane %v799_v13, %v294_v11  ;;  %v299_v21 = vrot.slane %v799_v13, %v298_v12  ;;  %p614_p2 = scmp.lt.s32.totalorder %s612_s26, %s606_s19 }
  0x1e   : > { %v324_v22 = vrot.slane %v799_v13, %v323_v14  ;;  %v328_v23 = vrot.slane %v799_v13, %v327_v15  ;;  %v353_v26 = vrot.slane %v799_v13, %v352_v16  ;;  %v357_v27 = vrot.slane %v799_v13, %v356_v17 }
  0x1f   : > { %v276_v28 = vrot.slane %v266_v18, %v265_v9  ;;  %v280_v29 = vrot.slane %v270_v19, %v265_v9  ;;  %v305_v30 = vrot.slane %v295_v20, %v294_v11  ;;  %v309_v31 = vrot.slane %v299_v21, %v294_v11  ;;  %p615_p3 = por %p614_p2, %p613_p1 }
  0x20   : > { %v334_v32 = vrot.slane %v324_v22, %v323_v14  ;;  %v338_v33 = vrot.slane %v328_v23, %v323_v14  ;;  %v363_v34 = vrot.slane %v353_v26, %v352_v16  ;;  %v367_v35 = vrot.slane %v357_v27, %v352_v16 }
  0x21   : > { %p616_p5 = pnand %p615_p3, %p609_p0 }
  0x91   : > { %v319_v24 = vpop.permute.xlu1 %318  ;;  %v260_v25 = vpop.permute.xlu0 %259 }
  0x92   : > { %v281_v37 = vmul.f32 %v276_v28, %v260_v25  ;;  %v282_v38 = vmul.f32 %v280_v29, %v260_v25  ;;  %v339_v42 = vmul.f32 %v334_v32, %v319_v24  ;;  %v340_v43 = vmul.f32 %v338_v33, %v319_v24 }
  0x95   : > { %v290_v36 = vpop.permute.xlu0 %289  ;;  %v348_v41 = vpop.permute.xlu1 %347 }
  0x96   : > { %v310_v39 = vmul.f32 %v305_v30, %v290_v36  ;;  %v311_v40 = vmul.f32 %v309_v31, %v290_v36  ;;  %v368_v46 = vmul.f32 %v363_v34, %v348_v41  ;;  %v369_v47 = vmul.f32 %v367_v35, %v348_v41 }
  0x98   : > { %v312_v44 = vadd.f32 %v310_v39, %v281_v37  ;;  %v313_v45 = vadd.f32 %v311_v40, %v282_v38 }
  0x99   : > { %v376_v52 = vpop.permute.xlu0 %375  ;;  %v386_v57 = vpop.permute.xlu1 %385 }
  0x9a   : > { %v341_v48 = vadd.f32 %v339_v42, %v312_v44  ;;  %v342_v49 = vadd.f32 %v340_v43, %v313_v45 }
  0x9c   : > { %v370_v50 = vadd.f32 %v368_v46, %v341_v48  ;;  %v371_v51 = vadd.f32 %v369_v47, %v342_v49 }
  0x9e   : > { %v378_v53 = vadd.f32 %v376_v52, %v370_v50  ;;  %v379_v54 = vadd.f32 %v376_v52, %v371_v51 }
  0xa0   : > { %v380_v55 = vmax.f32 %v378_v53, 0.0  ;;  %v381_v56 = vmax.f32 %v379_v54, 0.0 }
  0xa2   : > { %v388_v58 = vmul.f32 %v386_v57, %v380_v55  ;;  %v389_v59 = vmul.f32 %v386_v57, %v381_v56 }
  0xa4   : > { %v391_v60 = vsel %vm390_vm0, %v388_v58, 0.0  ;;  %v398_v61 = vsel %vm390_vm0, %v389_v59, 0.0 }
  0xa5   : > { %v392_v62 = vrot.slane %v391_v60, 4  ;;  %v399_v63 = vrot.slane %v398_v61, 4 }
  0xa7   : > { %v393_v0 = vadd.f32 %v392_v62, %v391_v60  ;;  %v400_v1 = vadd.f32 %v399_v63, %v398_v61 }
  0xa9   : > { %v394_v2 = vrot.slane %v393_v0, 2  ;;  %v401_v3 = vrot.slane %v400_v1, 2 }
  0xab   : > { %v395_v4 = vadd.f32 %v394_v2, %v393_v0  ;;  %v402_v5 = vadd.f32 %v401_v3, %v400_v1 }
  0xad   : > { %v396_v6 = vrot.slane %v395_v4, 1  ;;  %v403_v7 = vrot.slane %v402_v5, 1 }
  0xaf   : > { %v397_v9 = vadd.f32 %v396_v6, %v395_v4  ;;  %v404_v10 = vadd.f32 %v403_v7, %v402_v5 }
  0xb1   : > { %v407_v11 = vadd.f32 %v406_v8, %v397_v9  ;;  %v408_v12 = vadd.f32 %v406_v8, %v404_v10 }
  0xb3   : > { %v531_v14 = vmul.f32 -1.442695, %v407_v11  ;;  %v532_v15 = vmul.f32 -1.442695, %v408_v12 }
  0xb5   : > { %598 = vpow2.f32 %v531_v14 }
  0xb6   : > { %600 = vpow2.f32 %v532_v15 }
  0xbf   : > { %v599_v16 = vpop.eup %598 }
  0xc0   : > { %v601_v17 = vpop.eup %600  ;;  %v415_v18 = vadd.f32 1.0, %v599_v16 }
  0xc1   : > { %v416_v19 = vadd.f32 1.0, %v601_v17 }
  0xc2   : > { %602 = vrcp.f32 %v415_v18 }
  0xc3   : > { %604 = vrcp.f32 %v416_v19 }
  0xcc   : > { %v603_v20 = vpop.eup %602 }
  0xcd   : > { %v605_v21 = vpop.eup %604 }
  0xce   : > { %v423_v22 = vcombine.low %v603_v20, %v605_v21 }
  0xd0   : > { %v425_v23 = vmul.f32 %v423_v22, %v799_v13 }
  0xd2   : > { %426 = vst [vmem:[%s243_s13] sm:$0xff] %v425_v23 }
  0xd3   : > { %619 = shalt.err (!%p616_p5)
}
  0xd4   : > { %s620_s28 = scalar_lea.hbm %s815_s17, 128  ;;  %s624_s9 = scalar_lea.hbm %s867_s5, 256 }
  0xd5   : > { %p621_p6 = scmp.ne.s32.totalorder %s815_s17, %s620_s28  ;;  %p625_p10 = scmp.lt.u32.totalorder %s815_s17, %s867_s5 }
  0xd6   : > { %p626_p11 = scmp.lt.u32.totalorder %s624_s9, %s620_s28  ;;  %p628_p13 = scmp.lt.u32.totalorder %s620_s28, %s815_s17 }
  0xd7   : > { %p622_p7 = pnand %p621_p6, %p761_p4 }
  0xd8   : > { %p627_p12 = por %p626_p11, %p625_p10 }
  0xd9   : > { %p623_p9 = pneg %p622_p7 }
  0xda   : > { %p629_p0 = por %p628_p13, %p627_p12 }
  0xdc   : > { %p630_p1 = pnand %p629_p0, %p623_p9 }
  0xde   : > { %633 = shalt.err (!%p630_p1)
}
  0xdf   : > { %540 = dma.vmem_to_hbm [thread:$0]  (%p761_p4), %s817_s14, 128, %s815_s17, %s428_s18  }
  0xe0 PF: > { %p546_p2 = scmp.ge.s32.totalorder %s684_s25, 2  ;;  %s456_s12 = sand.u32 1, %s664_s20  }
  0xe1   : > { %s457_s13 = scalar_lea.sflag [#allocation4], %s456_s12 }
  0xe2   : > { %p543_p3 = pnand %p546_p2, %p768_p8 }
  0xe4   : > { %659 = dma.done.wait (!%p543_p3), %s457_s13, 128  }
  0xe5   : > { %661 = vsyncadd (!%p543_p3), %s457_s13, 4294967168  ;;  %s19_s25 = sadd.s32 1, %s684_s25   ;;  %s870_s20 = smov %s668_s21 }
  0xe6   : > { %p16_p5 = scmp.ge.s32.totalorder %s19_s25, 4   ;;  %s871_s21 = smov %s672_s22 }
  0xe7   : > { %s872_s22 = smov %s774_s7  ;;  %s873_s23 = smov %s680_s24 }
  0xe8   : > { %s874_s24 = smov %s876_s27  ;;  %18 = sbr.rel (!%p16_p5) target bundleno = 6 (0x6), region = 78 }
  0xef   :  { %462 = vsyncpa [#allocation4], 1 }
  0xf0   :  { %464 = vsyncpa [#allocation4 + $0x1], 1 }

</bundles_post_ra>
